<compile_context>
chip_gen: v7x
topology: tpu7x:2x2x1
jax: 0.10.0
libtpu: 0.0.40
codegen_flags: <defaults>
</compile_context>

<pallas_src>
import functools

import jax
import jax.numpy as jnp
import numpy as np
from jax.experimental import pallas as pl
from jax.experimental.pallas import tpu as pltpu

_EPS = 1e-4
_LANES = 128
_SUBLANES = 8
# (8192, 128) f32 = 4 MiB per input tile; 2 inputs x 2 pipeline buffers = 16 MiB.
_MAX_TILE_ROWS = 8192
_VMEM_LIMIT_BYTES = 32 * 1024 * 1024


def _bce_loss_kernel(x_ref, t_ref, out_ref, *, n, steps_per_partial,
                     first_masked_step, weight, hard_labels):
    p = pl.program_id(0)
    j = pl.program_id(1)
    step = p * steps_per_partial + j          # logical row-block index
    tile_rows, lanes = x_ref.shape            # static block shape

    @pl.when(j == 0)
    def _init():
        out_ref[...] = jnp.zeros_like(out_ref)

    def _accumulate(masked):
        x = x_ref[...].astype(jnp.float32)
        t = t_ref[...].astype(jnp.float32)
        if masked:
            # Global flat element index of this block vs. true count n.
            base = step * (tile_rows * lanes)
            row = jax.lax.broadcasted_iota(jnp.int32, (tile_rows, lanes), 0)
            lane = jax.lax.broadcasted_iota(jnp.int32, (tile_rows, lanes), 1)
            valid = (base + row * lanes + lane) < n
            # Sanitise padding/garbage BEFORE any log touches it (NaN safety).
            x = jnp.where(valid, x, 0.5)
            t = jnp.where(valid, t, 0.0)
        xc = jnp.clip(x, _EPS, 1.0 - _EPS)
        if hard_labels:
            # Binary-target fast path: one log per element.
            loss = -jnp.log(jnp.where(t > 0.5, xc, 1.0 - xc))
        else:
            a = jnp.log(1.0 - xc)
            b = jnp.log(xc)
            # -((1-t)*a + t*b) rewritten to save VALU ops.
            loss = -(a + t * (b - a))
        if weight is not None:
            # t*w + (1-t) == 1 + t*(w-1); exact for soft labels too.
            loss = loss * (1.0 + t * jnp.float32(weight - 1.0))
        if masked:
            loss = jnp.where(valid, loss, 0.0)
        # Partial reduce: fold whole (8,128) vregs into the resident output
        # accumulator (pure VPU adds; single cross-lane reduce happens outside).
        # TODO(synk): for n >~ 1e8 consider a compensated (Kahan) accumulator;
        # plain f32 running sums may drift past 1e-5 rtol at that scale.
        out_ref[...] += loss.reshape(-1, _SUBLANES, lanes).sum(axis=0)

    if first_masked_step is None:
        _accumulate(masked=False)
    else:
        @pl.when(step < first_masked_step)
        def _full_blocks():
            _accumulate(masked=False)

        @pl.when(step >= first_masked_step)
        def _tail_blocks():
            _accumulate(masked=True)


def custom_bce_loss(x, target, weight=None, *, hard_labels=False,
                    max_tile_rows=_MAX_TILE_ROWS, num_partials=None):
    """Pallas equivalent of CustomBCELoss.forward(x, target). Returns a scalar.

    Pass bf16 `x`/`target` where available: the kernel upcasts in-register and
    the HBM traffic (the only bottleneck) halves.
    """
    assert x.shape == target.shape, (x.shape, target.shape)
    assert max_tile_rows % _SUBLANES == 0, max_tile_rows
    n = int(x.size)
    assert n > 0

    xf = x.reshape(-1)
    tf = target.reshape(-1)

    rows = (n + _LANES - 1) // _LANES
    padded_n = rows * _LANES
    if padded_n != n:
        # Ragged lane tail (n % 128 != 0): pad only up to one lane row.
        xf = jnp.pad(xf, (0, padded_n - n))
        tf = jnp.pad(tf, (0, padded_n - n))
    x2 = xf.reshape(rows, _LANES)
    t2 = tf.reshape(rows, _LANES)

    # Row tiling (multiple of 8 sublanes); last logical block may overrun rows.
    tile_rows = min(max_tile_rows,
                    ((rows + _SUBLANES - 1) // _SUBLANES) * _SUBLANES)
    steps_total = (rows + tile_rows - 1) // tile_rows

    # Split the row-block stream across TensorCores (leading "parallel" axis).
    # Only split when the (at most one) redundant step is either absent or a
    # negligible fraction, so single-TC chips never regress.
    if num_partials is None:
        num_partials = 2 if (steps_total >= 2 and
                             (steps_total % 2 == 0 or steps_total >= 8)) else 1
    num_partials = max(1, min(int(num_partials), steps_total))
    steps_per_partial = (steps_total + num_partials - 1) // num_partials

    lane_pad = padded_n != n
    row_overrun = steps_total * tile_rows != rows
    redundant = num_partials * steps_per_partial != steps_total
    if lane_pad or row_overrun:
        first_masked_step = steps_total - 1      # tail block + any redundant
    elif redundant:
        first_masked_step = steps_total          # only redundant steps masked
    else:
        first_masked_step = None                 # no masking anywhere

    def _in_index_map(p, j):
        # Clamp redundant trailing steps of the last partial onto the final
        # real block (same index as the previous step -> no extra DMA);
        # the in-kernel mask zeroes their contribution.
        return (jnp.minimum(p * steps_per_partial + j, steps_total - 1), 0)

    kernel = functools.partial(
        _bce_loss_kernel,
        n=n,
        steps_per_partial=steps_per_partial,
        first_masked_step=first_masked_step,
        weight=None if weight is None else float(weight),
        hard_labels=bool(hard_labels),
    )

    out = pl.pallas_call(
        kernel,
        out_shape=jax.ShapeDtypeStruct((num_partials * _SUBLANES, _LANES),
                                       jnp.float32),
        grid_spec=pltpu.PrefetchScalarGridSpec(
            num_scalar_prefetch=0,
            grid=(num_partials, steps_per_partial),
            in_specs=[
                pl.BlockSpec((tile_rows, _LANES), _in_index_map),
                pl.BlockSpec((tile_rows, _LANES), _in_index_map),
            ],
            out_specs=pl.BlockSpec((_SUBLANES, _LANES), lambda p, j: (p, 0)),
        ),
        compiler_params=pltpu.CompilerParams(
            dimension_semantics=("parallel", "arbitrary"),
            vmem_limit_bytes=_VMEM_LIMIT_BYTES),
    )(x2, t2)

    # Tiny final reduction over (num_partials*8, 128) partials + mean scale.
    return jnp.sum(out) * jnp.float32(1.0 / n)


def _reference(x, target, weight=None):
    xc = jnp.clip(x.astype(jnp.float32), _EPS, 1.0 - _EPS)
    t = target.astype(jnp.float32)
    loss = -((1.0 - t) * jnp.log(1.0 - xc) + t * jnp.log(xc))
    if weight is not None:
        loss = loss * (t * weight + (1.0 - t))
    return loss.mean()


def _check(x, t, weight=None, **kw):
    out = jax.block_until_ready(custom_bce_loss(x, t, weight=weight, **kw))
    ref = jax.block_until_ready(_reference(x, t, weight=weight))
    np.testing.assert_allclose(np.asarray(out), np.asarray(ref),
                               rtol=1e-5, atol=1e-6)


if __name__ == "__main__":
    key = jax.random.PRNGKey(0)
    k1, k2, k3, k4, k5, k6, k7, k8 = jax.random.split(key, 8)

    # Primary case: NCHW segmentation-style BCE, n = 2048 (zero-copy, no mask).
    shape = (2, 4, 16, 16)
    x = jax.nn.sigmoid(jax.random.normal(k1, shape, dtype=jnp.float32))
    target = (jax.random.uniform(k2, shape) > 0.5).astype(jnp.float32)
    _check(x, target, weight=None)
    _check(x, target, weight=2.0)
    # Hard-label fast path (binary targets): single-log formula.
    _check(x, target, weight=2.0, hard_labels=True)

    # bf16 inputs (native-dtype streaming, in-register upcast).
    _check(x.astype(jnp.bfloat16), target.astype(jnp.bfloat16), weight=2.0)

    # Multi-block grid with a forced 2-core split, an uneven split (redundant
    # clamped step) AND a partial trailing block: exercises the in-kernel tail
    # mask and cross-step accumulation (tile forced small for the test).
    shape3 = (2, 2, 32, 20)  # 2560 elems -> 20 lane rows, tile 8 -> 3 blocks
    x3 = jax.nn.sigmoid(jax.random.normal(k3, shape3, dtype=jnp.float32))
    t3 = (jax.random.uniform(k4, shape3) > 0.5).astype(jnp.float32)
    _check(x3, t3, weight=None, max_tile_rows=8, num_partials=2)

    # Ragged element count (n % 128 != 0) with soft labels and a class weight.
    shape4 = (2, 4, 5, 25)   # 1000 elems
    x4 = jax.nn.sigmoid(jax.random.normal(k5, shape4, dtype=jnp.float32))
    t4 = jax.random.uniform(k6, shape4, dtype=jnp.float32)
    _check(x4, t4, weight=3.0)

    # Even automatic 2-partial split, no masking anywhere (auto heuristic).
    shape5 = (2, 4, 32, 32)  # 8192 elems -> 64 rows, tile 16 -> 4 blocks
    x5 = jax.nn.sigmoid(jax.random.normal(k7, shape5, dtype=jnp.float32))
    t5 = (jax.random.uniform(k8, shape5) > 0.5).astype(jnp.float32)
    _check(x5, t5, weight=None, max_tile_rows=16)

    print("KERNEL_OK")
</pallas_src>

<mosaic_0001>
module attributes {stable_mosaic.version = 11 : i64} {
  func.func @_bce_loss_kernel(%arg0: i32, %arg1: i32, %arg2: memref<16x128xf32, #tpu.memory_space<vmem>>, %arg3: memref<16x128xf32, #tpu.memory_space<vmem>>, %arg4: memref<8x128xf32, #tpu.memory_space<vmem>>) attributes {dimension_semantics = [#tpu.dimension_semantics<parallel>, #tpu.dimension_semantics<arbitrary>], iteration_bounds = array<i64: 1, 1>, scalar_prefetch = 0 : i64, scratch_operands = 0 : i64, tpu.core_type = #tpu.core_type<tc>, window_params = [{transform_indices = @transform_0, window_bounds = array<i64: 16, 128>}, {transform_indices = @transform_1, window_bounds = array<i64: 16, 128>}, {transform_indices = @transform_2, window_bounds = array<i64: 8, 128>}]} {
    %c0_i32 = arith.constant 0 : i32
    %0 = arith.cmpi eq, %arg1, %c0_i32 : i32
    %1 = arith.extui %0 : i1 to i32
    %c0_i32_0 = arith.constant 0 : i32
    %2 = arith.cmpi ne, %1, %c0_i32_0 : i32
    scf.if %2 {
      %cst_12 = arith.constant 0.000000e+00 : f32
      %23 = vector.broadcast %cst_12 : f32 to vector<8x128xf32>
      %c0_13 = arith.constant 0 : index
      %c0_14 = arith.constant 0 : index
      %24 = vector.load %arg4[%c0_13, %c0_14] : memref<8x128xf32, #tpu.memory_space<vmem>>, vector<8x128xf32>
      tpu.vector_store %arg4[%c0_13, %c0_14], %23 {strides = array<i32>} : memref<8x128xf32, #tpu.memory_space<vmem>>, vector<8x128xf32>,
    } else {
    }
    %c0 = arith.constant 0 : index
    %c0_1 = arith.constant 0 : index
    %3 = vector.load %arg2[%c0, %c0_1] : memref<16x128xf32, #tpu.memory_space<vmem>>, vector<16x128xf32>
    %c0_2 = arith.constant 0 : index
    %c0_3 = arith.constant 0 : index
    %4 = vector.load %arg3[%c0_2, %c0_3] : memref<16x128xf32, #tpu.memory_space<vmem>>, vector<16x128xf32>
    %cst = arith.constant 9.99999974E-5 : f32
    %cst_4 = arith.constant 0.999899983 : f32
    %5 = vector.broadcast %cst : f32 to vector<16x128xf32>
    %6 = arith.maximumf %5, %3 : vector<16x128xf32>
    %7 = vector.broadcast %cst_4 : f32 to vector<16x128xf32>
    %8 = arith.minimumf %7, %6 : vector<16x128xf32>
    %cst_5 = arith.constant 1.000000e+00 : f32
    %9 = vector.broadcast %cst_5 : f32 to vector<16x128xf32>
    %10 = arith.subf %9, %8 : vector<16x128xf32>
    %11 = math.log %10 : vector<16x128xf32>
    %12 = math.log %8 : vector<16x128xf32>
    %13 = arith.subf %12, %11 : vector<16x128xf32>
    %14 = arith.mulf %4, %13 : vector<16x128xf32>
    %15 = arith.addf %11, %14 : vector<16x128xf32>
    %cst_6 = arith.constant 0.000000e+00 : f32
    %16 = vector.broadcast %cst_6 : f32 to vector<16x128xf32>
    %17 = arith.subf %16, %15 : vector<16x128xf32>
    %c0_7 = arith.constant 0 : index
    %c0_8 = arith.constant 0 : index
    %18 = vector.load %arg4[%c0_7, %c0_8] : memref<8x128xf32, #tpu.memory_space<vmem>>, vector<8x128xf32>
    %19 = vector.shape_cast %17 : vector<16x128xf32> to vector<2x8x128xf32>
    %cst_9 = arith.constant dense<0.000000e+00> : vector<8x128xf32>
    %20 = vector.multi_reduction <add>, %19, %cst_9 [0] : vector<2x8x128xf32> to vector<8x128xf32>
    %21 = arith.addf %18, %20 : vector<8x128xf32>
    %c0_10 = arith.constant 0 : index
    %c0_11 = arith.constant 0 : index
    %22 = vector.load %arg4[%c0_10, %c0_11] : memref<8x128xf32, #tpu.memory_space<vmem>>, vector<8x128xf32>
    tpu.vector_store %arg4[%c0_10, %c0_11], %21 {strides = array<i32>} : memref<8x128xf32, #tpu.memory_space<vmem>>, vector<8x128xf32>,
    return
  }
  func.func @transform_0(%arg0: i32, %arg1: i32) -> (i32, i32) {
    %c1_i32 = arith.constant 1 : i32
    %0 = arith.muli %arg0, %c1_i32 : i32
    %1 = arith.addi %0, %arg1 : i32
    %c0_i32 = arith.constant 0 : i32
    %2 = arith.minsi %1, %c0_i32 : i32
    %c0_i32_0 = arith.constant 0 : i32
    %c0_i32_1 = arith.constant 0 : i32
    return %2, %c0_i32_0 : i32, i32
  }
  func.func @transform_1(%arg0: i32, %arg1: i32) -> (i32, i32) {
    %c1_i32 = arith.constant 1 : i32
    %0 = arith.muli %arg0, %c1_i32 : i32
    %1 = arith.addi %0, %arg1 : i32
    %c0_i32 = arith.constant 0 : i32
    %2 = arith.minsi %1, %c0_i32 : i32
    %c0_i32_0 = arith.constant 0 : i32
    %c0_i32_1 = arith.constant 0 : i32
    return %2, %c0_i32_0 : i32, i32
  }
  func.func @transform_2(%arg0: i32, %arg1: i32) -> (i32, i32) {
    %c0_i32 = arith.constant 0 : i32
    %c0_i32_0 = arith.constant 0 : i32
    return %arg0, %c0_i32 : i32, i32
  }
}

</mosaic_0001>

<bundles_post_ra>
// kernel: tpu_custom_call.1
= control target key start
LH: loop header
LB: loop body
LE: loop exit
PB: predicated region body
PF: predicated region fallthrough
CT: control target
= control target key end

     0   :  { %7 = vsyncpa [#allocation3], 0  ;;  %s257_s0 = inlined_call_operand.hbm [shape: f32[16,128], index: 0, kind: input, shape index: {}]   ;;  %s258_s1 = inlined_call_operand.hbm [shape: f32[16,128], index: 1, kind: input, shape index: {}]   ;;  %s259_s2 = inlined_call_operand.hbm [shape: f32[8,128], index: 2, kind: output, shape index: {}]  }
   0x1   :  { %8 = vsyncpa [#allocation6], 0 }
   0x2   :  { %9 = vsyncpa [#allocation4], 0  ;;  %s201_s9 = smov [#allocation2]   ;;  %s129_s13 = scalar_lea.hbm %s257_s0, 256 }
   0x3   :  { %s21_s10 = sshll.u32 %s201_s9, 4  ;;  %p130_p0 = scmp.ne.s32.totalorder %s257_s0, %s129_s13  ;;  %s22_s10 = int_to_ptr.vmem [resolvable:$true] %s21_s10 }
   0x4   :  { %p133_p1 = scmp.lt.u32.totalorder %s129_s13, %s257_s0 }
   0x6   :  { %p135_p2 = pnand %p133_p1, %p130_p0 }
   0x8   :  { %138 = shalt.err (!%p135_p2)
}
   0x9   :  { %s139_s18 = scalar_lea.vmem %s22_s10, 256  ;;  %p144_p4 = scmp.lt.s32.totalorder %s22_s10, %s22_s10 }
   0xa   :  { %p140_p3 = scmp.ne.s32.totalorder %s22_s10, %s139_s18  ;;  %p145_p5 = scmp.lt.s32.totalorder %s139_s18, %s139_s18 }
   0xc   :  { %p146_p6 = por %p145_p5, %p144_p4 }
   0xe   :  { %p147_p7 = pnand %p146_p6, %p140_p3 }
  0x10   :  { %150 = shalt.err (!%p147_p7)
}
  0x11   :  { %s202_s19 = smov 128   ;;  %s203_s20 = smov 8  }
  0x12   :  { %27 = dma.hbm_to_vmem [thread:$0]  %s257_s0, 256, %s22_s10, [#allocation3], %s202_s19, %s202_s19, %s203_s20  }
  0x13   :  { %s204_s23 = smov [#allocation5]   ;;  %s151_s27 = scalar_lea.hbm %s258_s1, 256 }
  0x14   :  { %s39_s24 = sshll.u32 %s204_s23, 4  ;;  %p152_p8 = scmp.ne.s32.totalorder %s258_s1, %s151_s27  ;;  %s40_s24 = int_to_ptr.vmem [resolvable:$true] %s39_s24 }
  0x15   :  { %p155_p9 = scmp.lt.u32.totalorder %s151_s27, %s258_s1 }
  0x17   :  { %p157_p10 = pnand %p155_p9, %p152_p8 }
  0x19   :  { %160 = shalt.err (!%p157_p10)
}
  0x1a   :  { %s161_s4 = scalar_lea.vmem %s40_s24, 256  ;;  %p166_p12 = scmp.lt.s32.totalorder %s40_s24, %s40_s24 }
  0x1b   :  { %p162_p11 = scmp.ne.s32.totalorder %s40_s24, %s161_s4  ;;  %p167_p13 = scmp.lt.s32.totalorder %s161_s4, %s161_s4 }
  0x1d   :  { %p168_p0 = por %p167_p13, %p166_p12 }
  0x1f   :  { %p169_p1 = pnand %p168_p0, %p162_p11 }
  0x21   :  { %172 = shalt.err (!%p169_p1)
}
  0x22   :  { %45 = dma.hbm_to_vmem [thread:$0]  %s258_s1, 256, %s40_s24, [#allocation6], %s202_s19, %s202_s19, %s203_s20  }
  0x23   :  { %195 = dma.done.wait [#allocation3], 256  }
  0x24   :  { %196 = vsyncadd [#allocation3], 4294967040 }
  0x25   :  { %197 = dma.done.wait [#allocation6], 256  }
  0x26   :  { %198 = vsyncadd [#allocation6], 4294967040  ;;  %v65_v0 = vld [vmem:[#allocation2] sm:$0xff]  ;;  %v66_v1 = vld [vmem:[#allocation2 + $0x8] sm:$0xff]  ;;  %s205_s1 = smov [#allocation7]  }
  0x27   :  { %v69_v2 = vmax.f32 %v65_v0, 0.0001  ;;  %v70_v3 = vmax.f32 %v66_v1, 0.0001  ;;  %v67_v15 = vld [vmem:[#allocation5] sm:$0xff]  ;;  %v68_v17 = vld [vmem:[#allocation5 + $0x8] sm:$0xff] }
  0x28   :  { %s101_s6 = sshll.u32 %s205_s1, 4  ;;  %s102_s6 = int_to_ptr.vmem [resolvable:$true] %s101_s6 }
  0x29   :  { %v71_v4 = vmin.f32 %v69_v2, 0.9999  ;;  %v72_v5 = vmin.f32 %v70_v3, 0.9999  ;;  %s173_s7 = scalar_lea.vmem %s102_s6, 128  ;;  %p178_p3 = scmp.lt.s32.totalorder %s102_s6, %s102_s6 }
  0x2a   :  { %p174_p2 = scmp.ne.s32.totalorder %s102_s6, %s173_s7  ;;  %p179_p4 = scmp.lt.s32.totalorder %s173_s7, %s173_s7 }
  0x2b   :  { %v73_v6 = vsub.f32 1.0, %v71_v4  ;;  %v74_v7 = vsub.f32 1.0, %v72_v5  ;;  %121 = vlog2.f32 %v71_v4 }
  0x2c   :  { %123 = vlog2.f32 %v72_v5  ;;  %p180_p5 = por %p179_p4, %p178_p3 }
  0x2d   :  { %125 = vlog2.f32 %v73_v6 }
  0x2e   :  { %127 = vlog2.f32 %v74_v7  ;;  %p181_p6 = pnand %p180_p5, %p174_p2 }
  0x35   :  { %v122_v8 = vpop.eup %121 }
  0x36   :  { %v124_v9 = vpop.eup %123  ;;  %v80_v10 = vmul.f32 0.6931472, %v122_v8 }
  0x37   :  { %v126_v11 = vpop.eup %125  ;;  %v82_v12 = vmul.f32 0.6931472, %v124_v9 }
  0x38   :  { %v128_v13 = vpop.eup %127  ;;  %v76_v14 = vmul.f32 0.6931472, %v126_v11 }
  0x39   :  { %v78_v16 = vmul.f32 0.6931472, %v128_v13 }
  0x3a   :  { %v83_v18 = vsub.f32 %v80_v10, %v76_v14 }
  0x3b   :  { %v84_v19 = vsub.f32 %v82_v12, %v78_v16 }
  0x3c   :  { %v85_v20 = vmul.f32 %v83_v18, %v67_v15 }
  0x3d   :  { %v86_v21 = vmul.f32 %v84_v19, %v68_v17 }
  0x3e   :  { %v87_v22 = vadd.f32 %v85_v20, %v76_v14 }
  0x3f   :  { %v88_v23 = vadd.f32 %v86_v21, %v78_v16 }
  0x40   :  { %v89_v24 = vsub.f32 0.0, %v87_v22 }
  0x41   :  { %v90_v25 = vsub.f32 0.0, %v88_v23 }
  0x43   :  { %v92_v26 = vadd.f32 %v90_v25, %v89_v24 }
  0x45   :  { %94 = vst [vmem:[#allocation7] sm:$0xff] %v92_v26 }
  0x46   :  { %184 = shalt.err (!%p181_p6)
}
  0x47   :  { %s185_s10 = scalar_lea.hbm %s259_s2, 128 }
  0x48   :  { %p186_p7 = scmp.ne.s32.totalorder %s259_s2, %s185_s10  ;;  %p189_p8 = scmp.lt.u32.totalorder %s185_s10, %s259_s2 }
  0x4a   :  { %p191_p9 = pnand %p189_p8, %p186_p7 }
  0x4c   :  { %194 = shalt.err (!%p191_p9)
}
  0x4d   :  { %104 = dma.vmem_to_hbm [thread:$0]  %s102_s6, 128, %s259_s2, [#allocation4]  }
  0x4e   :  { %199 = dma.done.wait [#allocation4], 128  }
  0x4f   :  { %200 = vsyncadd [#allocation4], 4294967168 }
  0x50   :  { %108 = vsyncpa [#allocation3], 1 }
  0x51   :  { %109 = vsyncpa [#allocation6], 1 }
  0x52   :  { %110 = vsyncpa [#allocation4], 1 }

</bundles_post_ra>
